<compile_context>
chip_gen: v5e
topology: v5e:2x2
jax: 0.10.0
libtpu: 0.0.40
codegen_flags: <defaults>
</compile_context>

<pallas_src>
import functools
import math

import jax
import jax.numpy as jnp
from jax.experimental import pallas as pl
from jax.experimental.pallas import tpu as pltpu


# ----------------------------------------------------------------------------
# Kernel 1: fused QKV projection (one wide matmul, scale folded into Q)
# ----------------------------------------------------------------------------
def _qkv_proj_kernel(x_ref, w_ref, q_ref, k_ref, v_ref, *, scale, dk_p, dv_p):
    x = x_ref[...]                                                    # (ts, E) bf16
    qkv = jnp.dot(x, w_ref[...],
                  preferred_element_type=jnp.float32)                 # (ts, 2*dk_p+dv_p) f32
    q = qkv[:, :dk_p] * scale                                         # fold 1/sqrt(d_k)
    k = qkv[:, dk_p:2 * dk_p]
    v = qkv[:, 2 * dk_p:]
    q_ref[...] = q.astype(q_ref.dtype)
    k_ref[...] = k.astype(k_ref.dtype)
    v_ref[...] = v.astype(v_ref.dtype)


# ----------------------------------------------------------------------------
# Kernel 2: flash attention with online softmax
# ----------------------------------------------------------------------------
def _flash_attn_kernel(q_ref, k_ref, v_ref, o_ref, m_sc, l_sc, acc_sc, *,
                       mask, tq, tk):
    qi = pl.program_id(1)
    kv = pl.program_id(2)
    nkv = pl.num_programs(2)

    @pl.when(kv == 0)
    def _init():
        m_sc[...] = jnp.full_like(m_sc, -jnp.inf)
        l_sc[...] = jnp.zeros_like(l_sc)
        acc_sc[...] = jnp.zeros_like(acc_sc)

    def body(apply_causal):
        q = q_ref[...]                 # (tq, dk_p) bf16, pre-scaled by 1/sqrt(d_k)
        k = k_ref[...]                 # (tk, dk_p) bf16
        # Q @ K^T without materializing a transpose of K; f32 accumulate on MXU.
        s = jax.lax.dot_general(
            q, k, dimension_numbers=(((1,), (1,)), ((), ())),
            preferred_element_type=jnp.float32)                       # (tq, tk) f32

        if mask:
            # PyTorch quirk: tril(w) then masked_fill(w == 0, -inf)
            #   == keep w only where (row >= col) and (w != 0).
            keep = s != 0.0
            if apply_causal:
                # Only diagonal-crossing tiles pay for the iotas + compare.
                row = qi * tq + jax.lax.broadcasted_iota(jnp.int32, (tq, tk), 0)
                col = kv * tk + jax.lax.broadcasted_iota(jnp.int32, (tq, tk), 1)
                keep = keep & (row >= col)
            s = jnp.where(keep, s, -jnp.inf)

        m_prev = m_sc[...]
        m_new = jnp.maximum(m_prev, jnp.max(s, axis=-1, keepdims=True))
        alpha = jnp.exp(m_prev - m_new)                               # (tq, 1)
        p = jnp.exp(s - m_new)                                        # (tq, tk) f32
        l_sc[...] = alpha * l_sc[...] + jnp.sum(p, axis=-1, keepdims=True)
        acc_sc[...] = alpha * acc_sc[...] + jnp.dot(
            p.astype(v_ref.dtype), v_ref[...],                        # bf16 x bf16
            preferred_element_type=jnp.float32)
        m_sc[...] = m_new

    if mask:
        # Last kv tile intersecting the causal region of this q tile.
        last_kv = jnp.minimum(nkv - 1, (qi * tq + tq - 1) // tk)
        in_range = kv <= last_kv
        # Tile entirely on/below the diagonal: every (row, col) has row >= col.
        fully_below = (kv * tk + tk - 1) <= (qi * tq)

        @pl.when(in_range & fully_below)
        def _below_diag():
            body(apply_causal=False)      # quirk check only, no iotas

        @pl.when(in_range & jnp.logical_not(fully_below))
        def _on_diag():
            body(apply_causal=True)       # full causal where-chain
    else:
        # Straight-line body: no always-true scf.if per kv step.
        body(apply_causal=False)

    @pl.when(kv == nkv - 1)
    def _finalize():
        l = l_sc[...]
        inv = pl.reciprocal(l, approx=True)        # EUP slot, per q row only
        inv = inv * (2.0 - l * inv)                # one Newton step -> ~f32 accuracy
        o_ref[...] = (acc_sc[...] * inv).astype(o_ref.dtype)


# ----------------------------------------------------------------------------
# Wrapper
# ----------------------------------------------------------------------------
def _round_up(n, m):
    return -(-n // m) * m


def _pick_tile(n, target, multiple):
    """Largest divisor of n that is <= target and a multiple of `multiple`, else n."""
    if n <= target:
        return n
    for t in range(target, multiple - 1, -1):
        if n % t == 0 and t % multiple == 0:
            return t
    return n


_VMEM_LIMIT = 48 * 1024 * 1024   # above scoped defaults, below every gen's physical VMEM


def scaled_dot_product_attention(x, wq, wk, wv, *, mask=False, tq=None, tk=None,
                                 compute_dtype=jnp.bfloat16):
    """x: (B, S, E); wq/wk: (E, d_k); wv: (E, d_v)  ->  (B, S, d_v)."""
    B, S, E = x.shape
    d_k = wq.shape[1]
    d_v = wv.shape[1]
    out_dtype = x.dtype
    scale = 1.0 / math.sqrt(d_k)

    # Lane-dense head dims: pad to a multiple of 128 with zero columns (zeros do
    # not change Q.K^T; padded V columns produce zero outputs we slice off).
    dk_p = _round_up(d_k, 128)
    dv_p = _round_up(d_v, 128)
    n_tot = 2 * dk_p + dv_p

    # Single concatenated weight -> one wide matmul fills the 256-wide MXU.
    w_cat = jnp.concatenate(
        [jnp.pad(wq, ((0, 0), (0, dk_p - d_k))),
         jnp.pad(wk, ((0, 0), (0, dk_p - d_k))),
         jnp.pad(wv, ((0, 0), (0, dv_p - d_v)))], axis=1).astype(compute_dtype)
    x_c = x.astype(compute_dtype)

    # ---- 1) fused QKV projection (hoisted out of the attention kv loop) ----
    ts = _pick_tile(S, 256, 8)
    assert S % ts == 0

    proj_cost = pl.CostEstimate(
        flops=2 * B * S * E * n_tot,
        transcendentals=0,
        bytes_accessed=2 * (B * S * E + E * n_tot + B * S * n_tot))

    q, k, v = pl.pallas_call(
        functools.partial(_qkv_proj_kernel, scale=scale, dk_p=dk_p, dv_p=dv_p),
        out_shape=(
            jax.ShapeDtypeStruct((B, S, dk_p), compute_dtype),
            jax.ShapeDtypeStruct((B, S, dk_p), compute_dtype),
            jax.ShapeDtypeStruct((B, S, dv_p), compute_dtype),
        ),
        grid_spec=pltpu.PrefetchScalarGridSpec(
            num_scalar_prefetch=0,
            grid=(B, S // ts),
            in_specs=[
                pl.BlockSpec((pl.Squeezed(), ts, E), lambda b, si: (b, si, 0)),
                pl.BlockSpec((E, n_tot), lambda b, si: (0, 0)),
            ],
            out_specs=[
                pl.BlockSpec((pl.Squeezed(), ts, dk_p), lambda b, si: (b, si, 0)),
                pl.BlockSpec((pl.Squeezed(), ts, dk_p), lambda b, si: (b, si, 0)),
                pl.BlockSpec((pl.Squeezed(), ts, dv_p), lambda b, si: (b, si, 0)),
            ],
        ),
        compiler_params=pltpu.CompilerParams(
            dimension_semantics=("parallel", "parallel"),
            vmem_limit_bytes=_VMEM_LIMIT),
        cost_estimate=proj_cost,
    )(x_c, w_cat)

    # ---- 2) flash attention --------------------------------------------------
    # tq raised to 512 (halves K/V HBM re-streaming); tk 128-aligned so the
    # (tq, tk) score tile and the QK^T MXU N dim stay lane-dense/unmasked.
    if tq is None:
        tq = _pick_tile(S, 512, 128)
        if tq == S and S > 512:
            tq = _pick_tile(S, 512, 8)
    if tk is None:
        tk = _pick_tile(S, 512, 128)
    assert S % tq == 0 and S % tk == 0

    def q_map(b, qi, kv):
        return (b, qi, 0)

    def kv_map(b, qi, kv):
        if mask:
            # Clamp so skipped (fully-masked) kv tiles don't trigger new DMAs.
            kv = jnp.minimum(kv, (qi * tq + tq - 1) // tk)
        return (b, kv, 0)

    nq = S // tq
    attn_cost = pl.CostEstimate(
        flops=2 * B * S * S * dk_p + 2 * B * S * S * dv_p,
        transcendentals=B * S * S,
        bytes_accessed=(2 * B * S * dk_p                       # Q
                        + 2 * nq * B * S * (dk_p + dv_p)       # K/V per q tile
                        + 4 * B * S * dv_p))                   # output

    # TODO(synk): on v5e, when S*(dk_p+dv_p)*2B fits VMEM, hold full K/V resident
    # per batch (constant-in-qi BlockSpec + pl.ds slicing) to kill the nq-fold
    # refetch; not needed at these sizes.
    out_p = pl.pallas_call(
        functools.partial(_flash_attn_kernel, mask=mask, tq=tq, tk=tk),
        out_shape=jax.ShapeDtypeStruct((B, S, dv_p), out_dtype),
        grid_spec=pltpu.PrefetchScalarGridSpec(
            num_scalar_prefetch=0,
            grid=(B, nq, S // tk),
            in_specs=[
                pl.BlockSpec((pl.Squeezed(), tq, dk_p), q_map),
                pl.BlockSpec((pl.Squeezed(), tk, dk_p), kv_map),
                pl.BlockSpec((pl.Squeezed(), tk, dv_p), kv_map),
            ],
            out_specs=pl.BlockSpec((pl.Squeezed(), tq, dv_p), q_map),
            scratch_shapes=[
                pltpu.VMEM((tq, 1), jnp.float32),     # running max  m
                pltpu.VMEM((tq, 1), jnp.float32),     # running sum  l
                pltpu.VMEM((tq, dv_p), jnp.float32),  # output accumulator
            ],
        ),
        compiler_params=pltpu.CompilerParams(
            dimension_semantics=("parallel", "parallel", "arbitrary"),
            vmem_limit_bytes=_VMEM_LIMIT),
        cost_estimate=attn_cost,
    )(q, k, v)

    return out_p[..., :d_v] if dv_p != d_v else out_p


# ----------------------------------------------------------------------------
# Pure-JAX reference (mirrors the PyTorch forward, incl. the tril/==0 quirk)
# ----------------------------------------------------------------------------
def _reference(x, wq, wk, wv, *, mask=False):
    q = x @ wq
    k = x @ wk
    v = x @ wv
    d_k = k.shape[-1]
    w = q @ jnp.swapaxes(k, -2, -1) / (d_k ** 0.5)
    if mask:
        tri = jnp.tril(jnp.ones(w.shape[-2:], bool))
        w = jnp.where(tri, w, 0.0)
        w = jnp.where(w == 0.0, -jnp.inf, w)
    w = jax.nn.softmax(w, axis=-1)
    return w @ v


if __name__ == "__main__":
    # Small shapes consistent with the module's forward.
    B, S, E = 2, 8, 32          # batch, seq, d_embed
    d_k, d_v = 16, 16

    key = jax.random.PRNGKey(0)
    kx, kq, kk, kvw = jax.random.split(key, 4)

    x = jax.random.normal(kx, (B, S, E), dtype=jnp.float32)

    # nn.Linear(d_embed, d, bias=False)-style init, stored pre-transposed (E, d).
    bound = 1.0 / math.sqrt(E)
    wq = jax.random.uniform(kq, (E, d_k), jnp.float32, -bound, bound)
    wk = jax.random.uniform(kk, (E, d_k), jnp.float32, -bound, bound)
    wv = jax.random.uniform(kvw, (E, d_v), jnp.float32, -bound, bound)

    # bf16 compute path -> compare against the f32 reference with bf16-level tol.
    TOL = dict(atol=2e-2, rtol=2e-2)

    # No-mask path
    out = scaled_dot_product_attention(x, wq, wk, wv, mask=False)
    jax.block_until_ready(out)
    ref = _reference(x, wq, wk, wv, mask=False)
    assert out.shape == ref.shape
    assert jnp.allclose(out.astype(jnp.float32), ref, **TOL), "no-mask mismatch"

    # Causal-mask path (reproduces the reference's tril/masked_fill quirk)
    out_m = scaled_dot_product_attention(x, wq, wk, wv, mask=True)
    jax.block_until_ready(out_m)
    ref_m = _reference(x, wq, wk, wv, mask=True)
    assert jnp.allclose(out_m.astype(jnp.float32), ref_m, **TOL), "mask mismatch"

    print("KERNEL_OK")
</pallas_src>

<mosaic_0001>
module attributes {stable_mosaic.version = 11 : i64} {
  func.func @_qkv_proj_kernel(%arg0: i32, %arg1: i32, %arg2: memref<1x8x32xbf16, #tpu.memory_space<vmem>>, %arg3: memref<32x384xbf16, #tpu.memory_space<vmem>>, %arg4: memref<1x8x128xbf16, #tpu.memory_space<vmem>>, %arg5: memref<1x8x128xbf16, #tpu.memory_space<vmem>>, %arg6: memref<1x8x128xbf16, #tpu.memory_space<vmem>>) attributes {dimension_semantics = [#tpu.dimension_semantics<parallel>, #tpu.dimension_semantics<parallel>], iteration_bounds = array<i64: 2, 1>, scalar_prefetch = 0 : i64, scratch_operands = 0 : i64, tpu.core_type = #tpu.core_type<tc>, window_params = [{transform_indices = @transform_0, window_bounds = array<i64: 1, 8, 32>}, {pipeline_mode = #tpu.pipeline_mode<synchronous>, transform_indices = @transform_1, window_bounds = array<i64: 32, 384>}, {transform_indices = @transform_2, window_bounds = array<i64: 1, 8, 128>}, {transform_indices = @transform_3, window_bounds = array<i64: 1, 8, 128>}, {transform_indices = @transform_4, window_bounds = array<i64: 1, 8, 128>}]} {
    %c0 = arith.constant 0 : index
    %c0_0 = arith.constant 0 : index
    %c0_1 = arith.constant 0 : index
    %0 = vector.load %arg2[%c0, %c0_0, %c0_1] : memref<1x8x32xbf16, #tpu.memory_space<vmem>>, vector<1x8x32xbf16>
    %1 = vector.shape_cast %0 : vector<1x8x32xbf16> to vector<8x32xbf16>
    %c0_2 = arith.constant 0 : index
    %c0_3 = arith.constant 0 : index
    %2 = vector.load %arg3[%c0_2, %c0_3] : memref<32x384xbf16, #tpu.memory_space<vmem>>, vector<32x384xbf16>
    %cst = arith.constant dense<0.000000e+00> : vector<8x384xf32>
    %3 = tpu.matmul %1, %2, %cst {dimension_numbers = #tpu.dot_dimension_numbers<[1], [0], [0], [1], [0, 0, 1, 1], [], []>} : vector<8x32xbf16>, vector<32x384xbf16>, vector<8x384xf32> -> vector<8x384xf32>
    %4 = vector.extract_strided_slice %3 {offsets = [0, 0], sizes = [8, 128], strides = [1, 1]} : vector<8x384xf32> to vector<8x128xf32>
    %cst_4 = arith.constant 2.500000e-01 : f32
    %5 = vector.broadcast %cst_4 : f32 to vector<8x128xf32>
    %6 = arith.mulf %4, %5 : vector<8x128xf32>
    %7 = vector.extract_strided_slice %3 {offsets = [0, 128], sizes = [8, 128], strides = [1, 1]} : vector<8x384xf32> to vector<8x128xf32>
    %8 = vector.extract_strided_slice %3 {offsets = [0, 256], sizes = [8, 128], strides = [1, 1]} : vector<8x384xf32> to vector<8x128xf32>
    %9 = arith.truncf %6 : vector<8x128xf32> to vector<8x128xbf16>
    %c0_5 = arith.constant 0 : index
    %c0_6 = arith.constant 0 : index
    %c0_7 = arith.constant 0 : index
    %10 = vector.load %arg4[%c0_5, %c0_6, %c0_7] : memref<1x8x128xbf16, #tpu.memory_space<vmem>>, vector<1x8x128xbf16>
    %11 = vector.shape_cast %10 : vector<1x8x128xbf16> to vector<8x128xbf16>
    %12 = vector.shape_cast %9 : vector<8x128xbf16> to vector<1x8x128xbf16>
    tpu.vector_store %arg4[%c0_5, %c0_6, %c0_7], %12 {strides = array<i32>} : memref<1x8x128xbf16, #tpu.memory_space<vmem>>, vector<1x8x128xbf16>,
    %13 = arith.truncf %7 : vector<8x128xf32> to vector<8x128xbf16>
    %c0_8 = arith.constant 0 : index
    %c0_9 = arith.constant 0 : index
    %c0_10 = arith.constant 0 : index
    %14 = vector.load %arg5[%c0_8, %c0_9, %c0_10] : memref<1x8x128xbf16, #tpu.memory_space<vmem>>, vector<1x8x128xbf16>
    %15 = vector.shape_cast %14 : vector<1x8x128xbf16> to vector<8x128xbf16>
    %16 = vector.shape_cast %13 : vector<8x128xbf16> to vector<1x8x128xbf16>
    tpu.vector_store %arg5[%c0_8, %c0_9, %c0_10], %16 {strides = array<i32>} : memref<1x8x128xbf16, #tpu.memory_space<vmem>>, vector<1x8x128xbf16>,
    %17 = arith.truncf %8 : vector<8x128xf32> to vector<8x128xbf16>
    %c0_11 = arith.constant 0 : index
    %c0_12 = arith.constant 0 : index
    %c0_13 = arith.constant 0 : index
    %18 = vector.load %arg6[%c0_11, %c0_12, %c0_13] : memref<1x8x128xbf16, #tpu.memory_space<vmem>>, vector<1x8x128xbf16>
    %19 = vector.shape_cast %18 : vector<1x8x128xbf16> to vector<8x128xbf16>
    %20 = vector.shape_cast %17 : vector<8x128xbf16> to vector<1x8x128xbf16>
    tpu.vector_store %arg6[%c0_11, %c0_12, %c0_13], %20 {strides = array<i32>} : memref<1x8x128xbf16, #tpu.memory_space<vmem>>, vector<1x8x128xbf16>,
    return
  }
  func.func @transform_0(%arg0: i32, %arg1: i32) -> (i32, i32, i32) {
    %c0_i32 = arith.constant 0 : i32
    %c0_i32_0 = arith.constant 0 : i32
    return %arg0, %arg1, %c0_i32 : i32, i32, i32
  }
  func.func @transform_1(%arg0: i32, %arg1: i32) -> (i32, i32) {
    %c0_i32 = arith.constant 0 : i32
    %c0_i32_0 = arith.constant 0 : i32
    %c0_i32_1 = arith.constant 0 : i32
    return %c0_i32, %c0_i32_0 : i32, i32
  }
  func.func @transform_2(%arg0: i32, %arg1: i32) -> (i32, i32, i32) {
    %c0_i32 = arith.constant 0 : i32
    %c0_i32_0 = arith.constant 0 : i32
    return %arg0, %arg1, %c0_i32 : i32, i32, i32
  }
  func.func @transform_3(%arg0: i32, %arg1: i32) -> (i32, i32, i32) {
    %c0_i32 = arith.constant 0 : i32
    %c0_i32_0 = arith.constant 0 : i32
    return %arg0, %arg1, %c0_i32 : i32, i32, i32
  }
  func.func @transform_4(%arg0: i32, %arg1: i32) -> (i32, i32, i32) {
    %c0_i32 = arith.constant 0 : i32
    %c0_i32_0 = arith.constant 0 : i32
    return %arg0, %arg1, %c0_i32 : i32, i32, i32
  }
}

</mosaic_0001>

<bundles_post_ra>
// kernel: tpu_custom_call.1
= control target key start
LH: loop header
LB: loop body
LE: loop exit
PB: predicated region body
PF: predicated region fallthrough
CT: control target
= control target key end

     0   :  { %s1162_s0 = inlined_call_operand.hbm [shape: bf16[2,8,32], index: 0, kind: input, shape index: {}]   ;;  %s1163_s1 = inlined_call_operand.hbm [shape: bf16[32,384], index: 1, kind: input, shape index: {}]   ;;  %s1164_s2 = inlined_call_operand.hbm [shape: bf16[2,8,128], index: 2, kind: output, shape index: {0}]   ;;  %s1165_s3 = inlined_call_operand.hbm [shape: bf16[2,8,128], index: 3, kind: output, shape index: {1}]   ;;  %s1166_s4 = inlined_call_operand.hbm [shape: bf16[2,8,128], index: 4, kind: output, shape index: {2}]  }
   0x1   :  { %1172 = sst [smem:[#allocation17_spill]] %s1162_s0 }
   0x2   :  { %10 = vsyncpa [#allocation3], 0 }
   0x3   :  { %12 = vsyncpa [#allocation3 + $0x1], 0 }
   0x4   :  { %13 = vsyncpa [#allocation6], 0 }
   0x5   :  { %14 = vsyncpa [#allocation4], 0 }
   0x6   :  { %16 = vsyncpa [#allocation4 + $0x1], 0 }
   0x7   :  { %17 = vsyncpa [#allocation9], 0 }
   0x8   :  { %19 = vsyncpa [#allocation9 + $0x1], 0  ;;  %s950_s15 = smov 0   ;;  %s952_s16 = smov 0  }
   0x9   :  { %s954_s17 = smov 0   ;;  %s956_s18 = smov 0  }
   0xa   :  { %s958_s19 = smov 0   ;;  %s960_s20 = smov 0  }
   0xb LB: > { %s981_s21 = sadd.s32 4294967295, %s920_s20   ;;  %p577_p0 = scmp.ge.s32.totalorder %s920_s20, 1  ;;  %s920_s20 = sphi %s960_s20, %s25_s20   ;;  %s916_s19 = sphi %s958_s19, %s1192_s19   ;;  %s912_s18 = sphi %s956_s18, %s1191_s18   ;;  %s908_s17 = sphi %s954_s17, %s1190_s17   ;;  %s904_s16 = sphi %s952_s16, %s1189_s16   ;;  %s900_s15 = sphi %s950_s15, %s1188_s15  }
   0xc   : > { %p60_p1 = scmp.eq.s32.totalorder %s981_s21, 0  ;;  %p175_p2 = scmp.lt.s32.totalorder %s920_s20, 3 }
   0xd   : > { %s186_s24 = sshll.u32 %s1163_s1, 4  ;;  %s922_s26 = smov [#allocation5]   ;;  %s187_s24 = int_to_ptr.hbm [resolvable:$true] %s186_s24 }
   0xe   : > { %p989_p3 = pnand %p577_p0, %p175_p2  ;;  %s188_s27 = sshll.u32 %s922_s26, 4  ;;  %s189_s27 = int_to_ptr.vmem [resolvable:$true] %s188_s27 }
   0xf   : > { %p579_p6 = scmp.ge.s32.totalorder %s920_s20, 2  ;;  %s923_s28 = smov 192  }
  0x10   : > { %p641_p4 = pneg %p989_p3  ;;  %s924_s29 = smov 12  }
  0x11   : > { %s1167_s30 = sadd.s32 4294967294, %s920_s20   ;;  %s37_s5 = sadd.s32 1, %s916_s19 }
  0x12   : > { %p642_p5 = pnand %p641_p4, %p60_p1  ;;  %s46_s6 = sadd.s32 1, %s908_s17 }
  0x13   : > { %p39_p7 = scmp.ge.s32.totalorder %s37_s5, 2  ;;  %p53_p8 = scmp.ne.s32.totalorder %s908_s17, %s904_s16 }
  0x14   : > { %644 = dma.hbm_to_vmem [thread:$0]  (!%p642_p5), %s187_s24, 768, %s189_s27, [#allocation6], %s923_s28, %s923_s28, %s924_s29  }
  0x15   : > { %p54_p9 = scmp.eq.s32.totalorder %s920_s20, 0  ;;  %p59_p10 = scmp.ne.s32.totalorder %s904_s16, %s900_s15 }
  0x16   : > { %s1194_s5 = smov (%p39_p7, %s37_s5), 0  ;;  %p106_p13 = scmp.eq.s32.totalorder %s981_s21, 1 }
  0x17   : > { %p1008_p11 = por %p54_p9, %p53_p8  ;;  %p1014_p12 = por %p60_p1, %p59_p10 }
  0x18   : > { %s41_s9 = ssub.s32 %s916_s19, %s1194_s5  ;;  %p112_p2 = scmp.eq.s32.totalorder %s1167_s30, 1 }
  0x19   : > { %p44_p0 = scmp.eq.s32.totalorder %s41_s9, 0  ;;  %p1023_p4 = por %p106_p13, %p53_p8 }
  0x1a   : > { %p660_p5 = scmp.lt.s32.totalorder %s920_s20, 2  ;;  %p1031_p7 = por %p112_p2, %p59_p10 }
  0x1b   : > { %s1029_s11 = scalar_select %p44_p0, %s908_s17, %s46_s6  }
  0x1c   : > { %s202_s13 = sand.u32 1, %s908_s17   ;;  %s581_s22 = sshll.u32 %s916_s19, 2 }
  0x1d   : > { %s580_s14 = sshll.u32 %s202_s13, 2  ;;  %s1178_s0 = sld [smem:[#allocation17_spill]] }
  0x1e   : > { %s206_s27 = scalar_lea.vmem [#allocation2], %s580_s14  ;;  %p646_p8 = pnand %p660_p5, %p1008_p11 }
  0x1f   : > { %s215_s28 = sshll.u32 %s206_s27, 4  ;;  %s203_s6 = scalar_lea.sflag [#allocation3], %s202_s13  ;;  %s216_s28 = int_to_ptr.vmem [resolvable:$true] %s215_s28 }
  0x21   : > { %224 = sbr.rel (%p989_p3) target bundleno = 223 (0xdf), region = 28 }
  0x23   : > { %s211_s26 = scalar_lea.hbm %s1178_s0, %s581_s22 }
  0x24   : > { %s213_s29 = sshll.u32 %s211_s26, 4  ;;  %s214_s29 = int_to_ptr.hbm [resolvable:$true] %s213_s29 }
  0x25   : > { %648 = dma.hbm_to_vmem [thread:$0]  (!%p646_p8), %s214_s29, 64, %s216_s28, %s203_s6  }
  0x26   : > { %s1045_s9 = sand.u32 1, %s904_s16  }
  0x27   : > { %s1048_s23 = sshll.u32 %s1045_s9, 2  ;;  %s227_s14 = scalar_lea.sflag [#allocation3], %s1045_s9 }
  0x28   : > { %s230_s22 = scalar_lea.vmem [#allocation2], %s1048_s23 }
  0x29   : > { %883 = dma.done.wait (%p1014_p12), %s227_s14, 64  }
  0x2a   : > { %885 = vsyncadd (%p1014_p12), %s227_s14, 4294967232 }
  0x2b   : > { %887 = dma.done.wait (%p60_p1), [#allocation6], 768  }
  0x2c   : > { %889 = vsyncadd (%p60_p1), [#allocation6], 4294966528  ;;  %v602_v0 = vld [vmem:[#allocation5 + $0x18] sm:$0xf]  ;;  %v627_v1 = vld [vmem:[#allocation5 + $0x20] sm:$0xf0] }
  0x2d   : > { %v626_v2 = vld [vmem:[#allocation5 + $0x1c] sm:$0xf]  ;;  %v603_v3 = vor.u32 %v627_v1, %v602_v0  ;;  %v604_v4 = vld [vmem:[#allocation5 + $0x24] sm:$0xf0]  ;;  %v610_v5 = vld [vmem:[#allocation5 + $0x20] sm:$0xf] }
  0x2e   : > { %v628_v6 = vld [vmem:[#allocation5 + $0x28] sm:$0xf0]  ;;  %v607_v7 = vor.u32 %v626_v2, %v604_v4  ;;  %v590_v9 = vld [vmem:[#allocation5] sm:$0xf]  ;;  %v623_v11 = vld [vmem:[#allocation5 + $0x4] sm:$0xf] }
  0x2f   : > { %v611_v8 = vor.u32 %v628_v6, %v610_v5  ;;  %v624_v10 = vld [vmem:[#allocation5 + $0x8] sm:$0xf0]  ;;  %323 = vmatpush.bf16.msra.mxu0 %v603_v3  ;;  %v592_v13 = vld [vmem:[#allocation5 + $0xc] sm:$0xf0]  ;;  %v598_v14 = vld [vmem:[#allocation5 + $0x8] sm:$0xf] }
  0x30   : > { %v591_v12 = vor.u32 %v624_v10, %v590_v9  ;;  %v625_v15 = vld [vmem:[#allocation5 + $0x10] sm:$0xf0]  ;;  %336 = vmatpush.bf16.msra.mxu1 %v607_v7  ;;  %v595_v16 = vor.u32 %v623_v11, %v592_v13  ;;  %v272_v18 = vld [vmem:[%s230_s22] sm:$0xf]  ;;  %vm313_vm0 = vcmask 261120   ;;  %s618_s25 = sshll.u32 %s912_s18, 2 }
  0x31   : > { %349 = vmatpush.bf16.msra.mxu2 %v611_v8  ;;  %v599_v17 = vor.u32 %v625_v15, %v598_v14  ;;  %s368_s7 = sand.u32 1, %s981_s21   ;;  %s400_s24 = scalar_lea.hbm %s1165_s3, %s618_s25 }
  0x32   : > { %s385_s28 = scalar_lea.hbm %s1164_s2, %s618_s25  ;;  %s263_s29 = scalar_lea.vmem [#allocation8], %s1048_s23 }
  0x33   : > { %324 = vmatpush.bf16.msra.mxu0 %v591_v12  ;;  %s1069_s6 = sshll.u32 %s263_s29, 4  ;;  %s1071_s14 = sshll.u32 %s400_s24, 4  ;;  %s403_s6 = int_to_ptr.vmem [resolvable:$true] %s1069_s6  ;;  %s405_s14 = int_to_ptr.hbm [resolvable:$true] %s1071_s14 }
  0x34   : > { %337 = vmatpush.bf16.msra.mxu1 %v595_v16  ;;  %s256_s18 = scalar_lea.vmem [#allocation7], %s1048_s23  ;;  %s1076_s22 = sshll.u32 %s385_s28, 4 }
  0x35   : > { %350 = vmatpush.bf16.msra.mxu2 %v599_v17  ;;  %s1074_s21 = sshll.u32 %s256_s18, 4  ;;  %1180 = sst [smem:[#allocation16_spill]] %s1076_s22 }
  0x36   : > { %612 = vmatmul.msk.bf16.vlgmr.msra.gmra.mxu0 %vm313_vm0, %v272_v18  ;;  %1179 = sst [smem:[#allocation15_spill]] %s1074_s21  ;;  %s415_s26 = scalar_lea.hbm %s1166_s4, %s618_s25 }
  0x37   : > { %613 = vmatmul.msk.bf16.vlgmr.msra.gmra.mxu1 %vm313_vm0, %v272_v18  ;;  %s1171_s24 = scalar_lea.vmem [#allocation10], %s1048_s23  ;;  %s1090_s28 = sshll.u32 %s415_s26, 4  ;;  %s420_s28 = int_to_ptr.hbm [resolvable:$true] %s1090_s28 }
  0x38   : > { %614 = vmatmul.msk.bf16.vlgmr.msra.gmra.mxu2 %vm313_vm0, %v272_v18  ;;  %s1088_s27 = sshll.u32 %s1171_s24, 4  ;;  %s1092_s30 = scalar_lea.sflag [#allocation9], %s368_s7  ;;  %s418_s27 = int_to_ptr.vmem [resolvable:$true] %s1088_s27 }
  0x39   : > { %s788_s0 = sshra.s32 %s405_s14, 4  ;;  %s789_s0 = int_to_ptr.hbm [resolvable:$true] %s788_s0 }
  0x3a   : > { %s790_s8 = scalar_lea.hbm %s789_s0, 4  ;;  %p795_p10 = scmp.lt.s32.totalorder %s789_s0, %s1165_s3 }
  0x3b   : > { %p791_p1 = scmp.ne.s32.totalorder %s789_s0, %s790_s8 }
  0x3d   : > { %p792_p3 = pnand %p791_p1, %p1023_p4 }
  0x3f   : > { %p793_p9 = pneg %p792_p3 }
  0xb3   : > { %v326_v19 = vpop.f32.mrf.mxu0 }
  0xb4   : > { %v356_v20 = vmul.f32 0.25, %v326_v19  ;;  %v339_v21 = vpop.f32.mrf.mxu1 }
  0xb5   : > { %v359_v22 = vpack.c.bf16 %v339_v21, %v339_v21 }
  0xb6   : > { %v357_v23 = vpack.c.bf16 %v356_v20, %v356_v20 }
  0xb7   : > { %360 = vst [vmem:[%s263_s29] sm:$0xf] %v359_v22  ;;  %s794_s29 = scalar_lea.hbm %s1165_s3, 8 }
  0xb8   : > { %358 = vst [vmem:[%s256_s18] sm:$0xf] %v357_v23  ;;  %p796_p11 = scmp.lt.s32.totalorder %s794_s29, %s790_s8 }
  0xba   : > { %p797_p12 = por %p796_p11, %p795_p10 }
  0xbc   : > { %p798_p13 = pnand %p797_p12, %p793_p9 }
  0xbe   : > { %801 = shalt.err (!%p798_p13)
}
  0xbf   : > { %s1181_s7 = sld [smem:[#allocation16_spill]]  ;;  %s364_s18 = scalar_lea.sflag [#allocation4], %s1045_s9 }
  0xc0   : > { %636 = dma.vmem_to_hbm [thread:$0]  (%p1023_p4), %s403_s6, 64, %s405_s14, %s1092_s30  }
  0xc1   : > { %s822_s22 = scalar_lea.hbm %s1164_s2, 8 }
  0xc5   : > { %s1182_s26 = int_to_ptr.hbm [resolvable:$true] %s1181_s7 }
  0xc6   : > { %s816_s24 = sshra.s32 %s1182_s26, 4  ;;  %s817_s24 = int_to_ptr.hbm [resolvable:$true] %s816_s24 }
  0xc7   : > { %s818_s25 = scalar_lea.hbm %s817_s24, 4  ;;  %p823_p8 = scmp.lt.s32.totalorder %s817_s24, %s1164_s2 }
  0xc8   : > { %p819_p0 = scmp.ne.s32.totalorder %s817_s24, %s818_s25  ;;  %p824_p1 = scmp.lt.s32.totalorder %s822_s22, %s818_s25 }
  0xca   : > { %p820_p2 = pnand %p819_p0, %p1023_p4  ;;  %p825_p3 = por %p824_p1, %p823_p8 }
  0xcc   : > { %p821_p5 = pneg %p820_p2 }
  0xce   : > { %p826_p9 = pnand %p825_p3, %p821_p5 }
  0xd0   : > { %829 = shalt.err (!%p826_p9)
}
  0xd1   : > { %s1183_s9 = smov %s1182_s26  ;;  %s1184_s6 = sld [smem:[#allocation15_spill]]  ;;  %v352_v24 = vpop.f32.mrf.mxu2  ;;  %v328_v26 = vpop.f32.mrf.mxu0 }
  0xd2   : > { %v361_v25 = vpack.c.bf16 %v352_v24, %v352_v24  ;;  %v341_v27 = vpop.f32.mrf.mxu1  ;;  %s1186_s24 = scalar_lea.vmem [#allocation10], %s1048_s23  ;;  %s844_s29 = sshra.s32 %s420_s28, 4  ;;  %s845_s29 = int_to_ptr.hbm [resolvable:$true] %s844_s29 }
  0xd3   : > { %s846_s26 = scalar_lea.hbm %s845_s29, 4  ;;  %s850_s0 = scalar_lea.hbm %s1166_s4, 8 }
  0xd4   : > { %362 = vst [vmem:[%s1186_s24] sm:$0xf] %v361_v25  ;;  %p847_p10 = scmp.ne.s32.totalorder %s845_s29, %s846_s26  ;;  %p851_p13 = scmp.lt.s32.totalorder %s845_s29, %s1166_s4 }
  0xd5   : > { %p852_p0 = scmp.lt.s32.totalorder %s850_s0, %s846_s26 }
  0xd6   : > { %p848_p11 = pnand %p847_p10, %p1023_p4 }
  0xd7   : > { %s1185_s14 = int_to_ptr.vmem [resolvable:$true] %s1184_s6  ;;  %p853_p2 = por %p852_p0, %p851_p13 }
  0xd8   : > { %635 = dma.vmem_to_hbm [thread:$0]  (%p1023_p4), %s1185_s14, 64, %s1183_s9, %s364_s18  }
  0xd9   : > { %p849_p12 = pneg %p848_p11 }
  0xdb   : > { %p854_p5 = pnand %p853_p2, %p849_p12 }
  0xdd   : > { %857 = shalt.err (!%p854_p5)
}
  0xde   : > { %637 = dma.vmem_to_hbm [thread:$0]  (%p1023_p4), %s418_s27, 64, %s420_s28, %s1092_s30   ;;  %v354_v28 = vpop.f32.mrf.mxu2 }
  0xdf PF: > { %s431_s23 = sand.u32 1, %s900_s15   ;;  %p650_p8 = pnand %p579_p6, %p1031_p7 }
  0xe0   : > { %s432_s22 = scalar_lea.sflag [#allocation4], %s431_s23 }
  0xe1   : > { %p651_p1 = pneg %p650_p8 }
  0xe3   : > { %891 = dma.done.wait (%p651_p1), %s432_s22, 64  }
  0xe4   : > { %893 = vsyncadd (%p651_p1), %s432_s22, 4294967232  ;;  %s1187_s8 = sadd.s32 4294967294, %s920_s20  }
  0xe5   : > { %s441_s13 = sand.u32 1, %s1187_s8  }
  0xe6   : > { %s442_s9 = scalar_lea.sflag [#allocation9], %s441_s13 }
  0xe7   : > { %895 = dma.done.wait (%p651_p1), %s442_s9, 128  }
  0xe8   : > { %897 = vsyncadd (%p651_p1), %s442_s9, 4294967168  ;;  %s25_s20 = sadd.s32 1, %s920_s20   ;;  %s1188_s15 = smov %s904_s16 }
  0xe9   : > { %p22_p4 = scmp.ge.s32.totalorder %s25_s20, 4   ;;  %s1189_s16 = smov %s908_s17 }
  0xea   : > { %s1190_s17 = smov %s1029_s11  ;;  %s1191_s18 = smov %s916_s19 }
  0xeb   : > { %s1192_s19 = smov %s1194_s5  ;;  %24 = sbr.rel (!%p22_p4) target bundleno = 11 (0xb), region = 109 }
  0xf0   :  { %458 = vsyncpa [#allocation3], 1 }
  0xf1   :  { %460 = vsyncpa [#allocation3 + $0x1], 1 }
  0xf2   :  { %461 = vsyncpa [#allocation6], 1 }
  0xf3   :  { %462 = vsyncpa [#allocation4], 1 }
  0xf4   :  { %464 = vsyncpa [#allocation4 + $0x1], 1 }
  0xf5   :  { %465 = vsyncpa [#allocation9], 1 }
  0xf6   :  { %467 = vsyncpa [#allocation9 + $0x1], 1 }

</bundles_post_ra>
